<compile_context>
chip_gen: v5e
topology: v5e:2x2
jax: 0.10.0
libtpu: 0.0.40
codegen_flags: <defaults>
</compile_context>

<pallas_src>
import functools

import jax
import jax.numpy as jnp
from jax.experimental import pallas as pl
from jax.experimental.pallas import tpu as pltpu


def _masked_removal_kernel(x_ref, a_ref, o_ref, *, binarize, yuv_interpolation,
                           threshold):
    """One (bb, C, thw) block.

    x_ref: (bb, 4, thw)  [B, G, R, event_reconstruction], spatial on lanes
    a_ref: (bb, 1, thw)  artifact map
    o_ref: (bb, 5, thw)  [masked B, masked G, masked R, event, artifact_map]
    """
    amap = a_ref[...]                               # native dtype, reused below
    amap_f = amap.astype(jnp.float32)

    if binarize:
        # Inverse of the binarized mask, computed directly (no 1 - mask).
        inverse_mask = jnp.where(amap_f > threshold, 0.0, 1.0)
    else:
        inverse_mask = 1.0 - amap_f                 # (bb, 1, thw)

    if yuv_interpolation:
        # NOTE: constants assume inputs normalized to [0, 1].
        b = x_ref[:, 0:1, :].astype(jnp.float32)
        g = x_ref[:, 1:2, :].astype(jnp.float32)
        r = x_ref[:, 2:3, :].astype(jnp.float32)
        # BGR -> YUV -> mask Y -> YUV -> BGR with constants folded:
        #   * the +-128/255 biases on U/V cancel exactly,
        #   * the 1.164 luma gain is folded into the forward Y coefficients.
        y16 = 1.164 * 16.0 / 255.0
        ys = ((1.164 * 0.098) * b + (1.164 * 0.504) * g
              + (1.164 * 0.257) * r + y16)          # 1.164 * (y0 + 16/255)
        ub = 0.439 * b - 0.291 * g - 0.148 * r      # u - 128/255
        vb = -0.071 * b - 0.368 * g + 0.439 * r     # v - 128/255
        yi = ys * inverse_mask - y16                # 1.164 * (masked_y - 16/255)
        ob = yi + 1.596 * vb
        og = yi - 0.392 * ub - 0.813 * vb
        orr = yi + 2.017 * ub
        # Clamp and store each channel directly into its output sub-view.
        o_ref[:, 0:1, :] = jnp.clip(ob, 0.0, 1.0).astype(o_ref.dtype)
        o_ref[:, 1:2, :] = jnp.clip(og, 0.0, 1.0).astype(o_ref.dtype)
        o_ref[:, 2:3, :] = jnp.clip(orr, 0.0, 1.0).astype(o_ref.dtype)
    else:
        bgr = x_ref[:, 0:3, :].astype(jnp.float32)  # ref-slice load, (bb,3,thw)
        o_ref[:, 0:3, :] = (bgr * inverse_mask).astype(o_ref.dtype)

    # Pass-through channels: straight slice load -> slice store, no compute.
    o_ref[:, 3:4, :] = x_ref[:, 3:4, :].astype(o_ref.dtype)
    o_ref[:, 4:5, :] = amap.astype(o_ref.dtype)


_MAX_LANE_TILE = 8192  # lanes/block: 10 ch x 8192 x 4 B x 2 buffers ~= 0.66 MB


def _choose_tiles(batch, hw):
    """Pick (batch_block bb, lane_tile thw) for the (B//bb, HW//thw) grid."""
    # Pack a few batch elements per step: cuts serial per-grid-step overhead
    # on v5e / v6e where the grid is a loop on a single TensorCore.
    bb = 1
    for cand in (8, 4, 2):
        if batch % cand == 0:
            bb = cand
            break

    # Lane tile: full HW when small, otherwise a 128-multiple divisor so the
    # double-buffered working set stays well inside every chip's scoped VMEM.
    if hw <= _MAX_LANE_TILE:
        thw = hw
    else:
        thw = _MAX_LANE_TILE
        while thw > 128 and hw % thw != 0:
            thw -= 128
        if hw % thw != 0:
            thw = hw  # irregular HW: fall back to the full extent

    # Keep at least two parallel blocks so v7x's two TensorCores both get
    # work (prefer splitting the lane axis when the image is big enough).
    if (batch // bb) * (hw // thw) < 2:
        if hw % 256 == 0 and hw >= 2048:
            thw = hw // 2
        elif bb > 1:
            bb //= 2
    return bb, thw


def masked_removal_combiner_forward(x, artifact_map, *, binarize=False,
                                    yuv_interpolation=False, soft_factor=0,
                                    threshold=0.0):
    """Matches MaskedRemovalCombiner.forward (NCHW in / NCHW out, 5 channels).

    Output dtype == x.dtype (preserves the caller's dtype, like PyTorch).
    """
    if binarize and soft_factor > 0:
        # TODO(synk): GaussianBlur(kernel=2*soft_factor+1, sigma=soft_factor)
        # on the binarized mask is not implemented in the Pallas kernel.
        raise NotImplementedError("GaussianBlur path not implemented")

    B, C, H, W = x.shape
    assert C == 4, "expected 3 BGR channels + 1 event-reconstruction channel"
    assert artifact_map.shape == (B, 1, H, W)
    HW = H * W
    out_dtype = x.dtype

    # Free layout change only (merge of trailing contiguous dims); no casts.
    x_flat = x.reshape(B, C, HW)
    a_flat = artifact_map.reshape(B, 1, HW)

    bb, thw = _choose_tiles(B, HW)
    grid = (B // bb, HW // thw)

    kernel = functools.partial(
        _masked_removal_kernel,
        binarize=binarize,
        yuv_interpolation=yuv_interpolation,
        threshold=float(threshold),
    )

    out = pl.pallas_call(
        kernel,
        out_shape=jax.ShapeDtypeStruct((B, 5, HW), out_dtype),
        grid=grid,
        in_specs=[
            pl.BlockSpec((bb, C, thw), lambda ib, ih: (ib, 0, ih)),
            pl.BlockSpec((bb, 1, thw), lambda ib, ih: (ib, 0, ih)),
        ],
        out_specs=pl.BlockSpec((bb, 5, thw), lambda ib, ih: (ib, 0, ih)),
        compiler_params=pltpu.CompilerParams(
            dimension_semantics=("parallel", "parallel")),
    )(x_flat, a_flat)

    return out.reshape(B, 5, H, W)


if __name__ == "__main__":
    B, C, H, W = 2, 4, 16, 16
    key = jax.random.PRNGKey(0)
    kx, ka = jax.random.split(key)
    x = jax.random.uniform(kx, (B, C, H, W), dtype=jnp.float32)
    artifact_map = jax.random.uniform(ka, (B, 1, H, W), dtype=jnp.float32)

    # --- default config: binarize=False, yuv_interpolation=False ---
    out = jax.block_until_ready(
        masked_removal_combiner_forward(x, artifact_map))

    inv = 1.0 - artifact_map
    ref = jnp.concatenate([x[:, :3] * inv, x[:, 3:4], artifact_map], axis=1)
    assert out.shape == (B, 5, H, W), out.shape
    assert out.dtype == x.dtype, out.dtype
    assert bool(jnp.all(jnp.isfinite(out)))
    assert bool(jnp.allclose(out, ref, atol=1e-6)), "default path mismatch"

    # --- binarize + yuv_interpolation static paths ---
    thr = 0.5
    out2 = jax.block_until_ready(masked_removal_combiner_forward(
        x, artifact_map, binarize=True, yuv_interpolation=True, threshold=thr))

    mask2 = (artifact_map > thr).astype(jnp.float32)
    inv2 = 1.0 - mask2
    b_, g_, r_ = x[:, 0:1], x[:, 1:2], x[:, 2:3]
    y = 0.098 * b_ + 0.504 * g_ + 0.257 * r_ + 16.0 / 255.0
    u = 0.439 * b_ - 0.291 * g_ - 0.148 * r_ + 128.0 / 255.0
    v = -0.071 * b_ - 0.368 * g_ + 0.439 * r_ + 128.0 / 255.0
    y = y * inv2
    yb, ub, vb = y - 16.0 / 255.0, u - 128.0 / 255.0, v - 128.0 / 255.0
    ob = 1.164 * yb + 1.596 * vb
    og = 1.164 * yb - 0.392 * ub - 0.813 * vb
    orr = 1.164 * yb + 2.017 * ub
    mbgr = jnp.clip(jnp.concatenate([ob, og, orr], axis=1), 0.0, 1.0)
    ref2 = jnp.concatenate([mbgr, x[:, 3:4], artifact_map], axis=1)
    assert out2.shape == (B, 5, H, W), out2.shape
    assert out2.dtype == x.dtype, out2.dtype
    assert bool(jnp.allclose(out2, ref2, atol=1e-5)), "yuv path mismatch"

    print("KERNEL_OK")
</pallas_src>

<mosaic_0001>
module attributes {stable_mosaic.version = 11 : i64} {
  func.func @_masked_removal_kernel(%arg0: i32, %arg1: i32, %arg2: memref<1x4x256xf32, #tpu.memory_space<vmem>>, %arg3: memref<1x1x256xf32, #tpu.memory_space<vmem>>, %arg4: memref<1x5x256xf32, #tpu.memory_space<vmem>>) attributes {dimension_semantics = [#tpu.dimension_semantics<parallel>, #tpu.dimension_semantics<parallel>], iteration_bounds = array<i64: 2, 1>, scalar_prefetch = 0 : i64, scratch_operands = 0 : i64, tpu.core_type = #tpu.core_type<tc>, window_params = [{transform_indices = @transform_0, window_bounds = array<i64: 1, 4, 256>}, {transform_indices = @transform_1, window_bounds = array<i64: 1, 1, 256>}, {transform_indices = @transform_2, window_bounds = array<i64: 1, 5, 256>}]} {
    %c0 = arith.constant 0 : index
    %c0_0 = arith.constant 0 : index
    %c0_1 = arith.constant 0 : index
    %0 = vector.load %arg3[%c0, %c0_0, %c0_1] : memref<1x1x256xf32, #tpu.memory_space<vmem>>, vector<1x1x256xf32>
    %cst = arith.constant 1.000000e+00 : f32
    %1 = vector.broadcast %cst : f32 to vector<1x1x256xf32>
    %2 = arith.subf %1, %0 : vector<1x1x256xf32>
    %c0_2 = arith.constant 0 : index
    %c0_3 = arith.constant 0 : index
    %c0_4 = arith.constant 0 : index
    %3 = vector.load %arg2[%c0_2, %c0_3, %c0_4] : memref<1x4x256xf32, #tpu.memory_space<vmem>>, vector<1x3x256xf32>
    %4 = vector.broadcast %2 : vector<1x1x256xf32> to vector<1x3x256xf32>
    %5 = arith.mulf %3, %4 : vector<1x3x256xf32>
    %c0_5 = arith.constant 0 : index
    %c0_6 = arith.constant 0 : index
    %c0_7 = arith.constant 0 : index
    %6 = vector.load %arg4[%c0_5, %c0_6, %c0_7] : memref<1x5x256xf32, #tpu.memory_space<vmem>>, vector<1x3x256xf32>
    tpu.vector_store %arg4[%c0_5, %c0_6, %c0_7], %5 {strides = array<i32>} : memref<1x5x256xf32, #tpu.memory_space<vmem>>, vector<1x3x256xf32>,
    %c0_8 = arith.constant 0 : index
    %c3 = arith.constant 3 : index
    %c0_9 = arith.constant 0 : index
    %7 = vector.load %arg2[%c0_8, %c3, %c0_9] : memref<1x4x256xf32, #tpu.memory_space<vmem>>, vector<1x1x256xf32>
    %c0_10 = arith.constant 0 : index
    %c3_11 = arith.constant 3 : index
    %c0_12 = arith.constant 0 : index
    %8 = vector.load %arg4[%c0_10, %c3_11, %c0_12] : memref<1x5x256xf32, #tpu.memory_space<vmem>>, vector<1x1x256xf32>
    tpu.vector_store %arg4[%c0_10, %c3_11, %c0_12], %7 {strides = array<i32>} : memref<1x5x256xf32, #tpu.memory_space<vmem>>, vector<1x1x256xf32>,
    %c0_13 = arith.constant 0 : index
    %c4 = arith.constant 4 : index
    %c0_14 = arith.constant 0 : index
    %9 = vector.load %arg4[%c0_13, %c4, %c0_14] : memref<1x5x256xf32, #tpu.memory_space<vmem>>, vector<1x1x256xf32>
    tpu.vector_store %arg4[%c0_13, %c4, %c0_14], %0 {strides = array<i32>} : memref<1x5x256xf32, #tpu.memory_space<vmem>>, vector<1x1x256xf32>,
    return
  }
  func.func @transform_0(%arg0: i32, %arg1: i32) -> (i32, i32, i32) {
    %c0_i32 = arith.constant 0 : i32
    %c0_i32_0 = arith.constant 0 : i32
    return %arg0, %c0_i32, %arg1 : i32, i32, i32
  }
  func.func @transform_1(%arg0: i32, %arg1: i32) -> (i32, i32, i32) {
    %c0_i32 = arith.constant 0 : i32
    %c0_i32_0 = arith.constant 0 : i32
    return %arg0, %c0_i32, %arg1 : i32, i32, i32
  }
  func.func @transform_2(%arg0: i32, %arg1: i32) -> (i32, i32, i32) {
    %c0_i32 = arith.constant 0 : i32
    %c0_i32_0 = arith.constant 0 : i32
    return %arg0, %c0_i32, %arg1 : i32, i32, i32
  }
}

</mosaic_0001>

<bundles_post_ra>
// kernel: tpu_custom_call.1
= control target key start
LH: loop header
LB: loop body
LE: loop exit
PB: predicated region body
PF: predicated region fallthrough
CT: control target
= control target key end

     0   :  { %7 = vsyncpa [#allocation3], 0  ;;  %s703_s0 = inlined_call_operand.hbm [shape: f32[2,4,256], index: 0, kind: input, shape index: {}]   ;;  %s704_s1 = inlined_call_operand.hbm [shape: f32[2,1,256], index: 1, kind: input, shape index: {}]   ;;  %s705_s2 = inlined_call_operand.vmem [shape: f32[2,5,256], index: 2, kind: output, shape index: {}]  }
   0x1   :  { %9 = vsyncpa [#allocation3 + $0x1], 0 }
   0x2   :  { %10 = vsyncpa [#allocation5], 0 }
   0x3   :  { %12 = vsyncpa [#allocation5 + $0x1], 0  ;;  %s599_s9 = smov 0   ;;  %s601_s10 = smov 0  }
   0x4   :  { %s603_s11 = smov 0   ;;  %s605_s12 = smov 0  }
   0x5   :  { %s607_s13 = smov 0   ;;  %s609_s14 = smov 0  }
   0x6 LB: > { %s387_s15 = sadd.s32 4294967295, %s582_s14   ;;  %s30_s16 = sadd.s32 1, %s578_s13  ;;  %s582_s14 = sphi %s609_s14, %s18_s14   ;;  %s578_s13 = sphi %s607_s13, %s713_s13   ;;  %s574_s12 = sphi %s605_s12, %s712_s12   ;;  %s570_s11 = sphi %s603_s11, %s711_s11   ;;  %s566_s10 = sphi %s601_s10, %s710_s10   ;;  %s562_s9 = sphi %s599_s9, %s709_s9  }
   0x7   : > { %p32_p0 = scmp.ge.s32.totalorder %s30_s16, 2  ;;  %s39_s17 = sadd.s32 1, %s570_s11 }
   0x8   : > { %p46_p1 = scmp.ne.s32.totalorder %s570_s11, %s566_s10  ;;  %p47_p2 = scmp.eq.s32.totalorder %s582_s14, 0 }
   0x9   : > { %s715_s16 = smov (%p32_p0, %s30_s16), 0  ;;  %p52_p4 = scmp.ne.s32.totalorder %s566_s10, %s562_s9 }
   0xa   : > { %p635_p3 = por %p47_p2, %p46_p1  ;;  %s34_s19 = ssub.s32 %s578_s13, %s715_s16 }
   0xb   : > { %p53_p5 = scmp.eq.s32.totalorder %s387_s15, 0  ;;  %p37_p6 = scmp.eq.s32.totalorder %s34_s19, 0 }
   0xc   : > { %p419_p8 = scmp.lt.s32.totalorder %s582_s14, 2  ;;  %s132_s22 = sand.u32 1, %s570_s11  }
   0xd   : > { %p642_p7 = por %p53_p5, %p52_p4  ;;  %s406_s23 = sshll.u32 %s578_s13, 3 }
   0xe   : > { %s648_s21 = scalar_select %p37_p6, %s570_s11, %s39_s17  }
   0xf   : > { %s391_s24 = sshll.u32 %s132_s22, 3  ;;  %s143_s27 = scalar_lea.hbm %s703_s0, %s406_s23 }
  0x10   : > { %s145_s28 = sshll.u32 %s143_s27, 4  ;;  %s136_s29 = scalar_lea.vmem [#allocation2], %s391_s24  ;;  %s146_s28 = int_to_ptr.hbm [resolvable:$true] %s145_s28 }
  0x11   : > { %s147_s30 = sshll.u32 %s136_s29, 4  ;;  %p657_p9 = pnand %p419_p8, %p635_p3  ;;  %s148_s30 = int_to_ptr.vmem [resolvable:$true] %s147_s30 }
  0x12   : > { %p396_p10 = scmp.ge.s32.totalorder %s582_s14, 1  ;;  %p173_p11 = scmp.lt.s32.totalorder %s582_s14, 3 }
  0x13   : > { %s394_s4 = sshll.u32 %s132_s22, 1  ;;  %s133_s5 = scalar_lea.sflag [#allocation3], %s132_s22 }
  0x14   : > { %415 = dma.hbm_to_vmem [thread:$0]  (!%p657_p9), %s146_s28, 128, %s148_s30, %s133_s5  }
  0x15   : > { %p174_p12 = pnand %p396_p10, %p173_p11  ;;  %s395_s6 = sshll.u32 %s578_s13, 1 }
  0x16   : > { %s158_s7 = scalar_lea.vmem [#allocation4], %s394_s4  ;;  %s164_s17 = scalar_lea.hbm %s704_s1, %s395_s6 }
  0x17   : > { %s168_s8 = sshll.u32 %s158_s7, 4  ;;  %s166_s18 = sshll.u32 %s164_s17, 4  ;;  %s169_s8 = int_to_ptr.vmem [resolvable:$true] %s168_s8  ;;  %s167_s18 = int_to_ptr.hbm [resolvable:$true] %s166_s18 }
  0x18   : > { %s155_s19 = scalar_lea.sflag [#allocation5], %s132_s22  ;;  %177 = sbr.rel (%p174_p12) target bundleno = 53 (0x35), region = 28 }
  0x19   : > { %418 = dma.hbm_to_vmem [thread:$0]  (!%p657_p9), %s167_s18, 32, %s169_s8, %s155_s19  }
  0x1a   : > { %s179_s23 = sand.u32 (!%p174_p12), 1, %s566_s10  }
  0x1b   : > { %s397_s24 = sshll.u32 (!%p174_p12), %s179_s23, 3  ;;  %s180_s25 = scalar_lea.sflag (!%p174_p12), [#allocation3], %s179_s23 }
  0x1c   : > { %s183_s26 = scalar_lea.vmem (!%p174_p12), [#allocation2], %s397_s24 }
  0x1d   : > { %553 = dma.done.wait (%p642_p7), %s180_s25, 128  }
  0x1e   : > { %555 = vsyncadd (%p642_p7), %s180_s25, 4294967168  ;;  %s398_s27 = sshll.u32 %s179_s23, 1  ;;  %s190_s28 = scalar_lea.sflag [#allocation5], %s179_s23 }
  0x1f   : > { %s193_s29 = scalar_lea.vmem [#allocation4], %s398_s27 }
  0x20   : > { %557 = dma.done.wait (%p642_p7), %s190_s28, 32  }
  0x21   : > { %559 = vsyncadd (%p642_p7), %s190_s28, 4294967264  ;;  %p227_p13 = scmp.lt.s32.totalorder %s574_s12, 1  ;;  %v257_v0 = vlaneseq  ;;  %v236_v1 = vld [vmem:[%s193_s29] sm:$0x3]  ;;  %vm243_vm1 = vcmask 1043456  }
  0x22   : > { %v237_v2 = vsub.f32 1.0, %v236_v1  ;;  %v401_v3 = vld [vmem:[%s183_s26 + $0x3] ss:$4 sm:$0x3]  ;;  %v238_v6 = vld [vmem:[%s183_s26] sm:$0x77] }
  0x23   : > { %s717_s12 = smov (!%p227_p13, %s574_s12), 1  ;;  %vm259_vm0 = vcmp.lt.s32.totalorder %v257_v0, 256 }
  0x24   : > { %s407_s22 = sshll.u32 %s717_s12, 4  ;;  %v240_v4 = vperm.slane %v237_v2, 0  ;;  %v241_v5 = vperm.slane %v237_v2, 1 }
  0x25   : > { %s234_s4 = scalar_lea.vmem %s705_s2, %s407_s22 }
  0x26   : > { %402 = vst.msk [vmem:[%s234_s4 + $0x3] ss:$8 sm:$0x3] %vm259_vm0, %v401_v3  ;;  %v242_v7 = vrot.slane %v241_v5, 4 }
  0x27   : > { %403 = vst.msk [vmem:[%s234_s4 + $0x4] ss:$8 sm:$0x3] %vm259_vm0, %v236_v1 }
  0x28   : > { %v244_v8 = vsel %vm243_vm1, %v240_v4, %v242_v7 }
  0x29   : > { %v246_v9 = vmul.f32 %v244_v8, %v238_v6 }
  0x2b   : > { %248 = vst [vmem:[#allocation1] ss:$2 sm:$0xff] %v246_v9 }
  0x32   : > { %v249_v10 = vld.sshfl [vmem:[#allocation1] sm:$0xff pattern:$0x75316420]  ;;  %v250_v11 = vld.sshfl [vmem:[#allocation1 + $0x8] sm:$0xff pattern:$0x75316420] }
  0x33   : > { %253 = vst [vmem:[%s234_s4] sm:$0x7] %v249_v10 }
  0x34   : > { %254 = vst [vmem:[%s234_s4 + $0x8] sm:$0x7] %v250_v11 }
  0x35 PF: > { %s18_s14 = sadd.s32 1, %s582_s14   ;;  %s709_s9 = smov %s566_s10 }
  0x36   : > { %p15_p0 = scmp.ge.s32.totalorder %s18_s14, 4   ;;  %s710_s10 = smov %s570_s11 }
  0x37   : > { %s711_s11 = smov %s648_s21  ;;  %s712_s12 = smov %s578_s13 }
  0x38   : > { %s713_s13 = smov %s715_s16  ;;  %17 = sbr.rel (!%p15_p0) target bundleno = 6 (0x6), region = 84 }
  0x3d   :  { %297 = vsyncpa [#allocation3], 1 }
  0x3e   :  { %299 = vsyncpa [#allocation3 + $0x1], 1 }
  0x3f   :  { %300 = vsyncpa [#allocation5], 1 }
  0x40   :  { %302 = vsyncpa [#allocation5 + $0x1], 1 }

</bundles_post_ra>
